<compile_context>
chip_gen: v7x
topology: tpu7x:2x2x1
jax: 0.10.0
libtpu: 0.0.40
codegen_flags: <defaults>
</compile_context>

<pallas_src>
import math
import numpy as np
import jax
import jax.numpy as jnp
from jax.experimental import pallas as pl
from jax.experimental.pallas import tpu as pltpu


def _make_eca_kernel(kernel_size: int, hw: int):
    pad = (kernel_size - 1) // 2
    inv_hw = 1.0 / float(hw)

    def kernel(w_ref, x_ref, o_ref):
        # w_ref: (k,) f32 in SMEM; x_ref/o_ref: (Bt, C, HW) in VMEM (native dtype).
        x = x_ref[...]                                                  # (Bt, C, HW)

        # Global average pool (AdaptiveAvgPool2d(1)) with f32 accumulation.
        y = jnp.sum(x, axis=-1, dtype=jnp.float32) * inv_hw             # (Bt, C)
        bt, c = y.shape

        # Conv1d(1, 1, k, padding=(k-1)//2, bias=False) along the channel axis,
        # expressed as k zero-padded shifted multiply-adds (VPU/XLU work only).
        if pad > 0:
            zpad = jnp.zeros((bt, pad), dtype=jnp.float32)
            yp = jnp.concatenate([zpad, y, zpad], axis=-1)              # (Bt, C + 2*pad)
        else:
            yp = y
        z = jnp.zeros_like(y)
        for i in range(kernel_size):                                    # k is tiny & static
            z = z + w_ref[i] * yp[:, i:i + c]

        # Sigmoid gate, then scale x in its native dtype (lane-dense store).
        s = jax.nn.sigmoid(z).astype(o_ref.dtype)                       # (Bt, C)
        o_ref[...] = x * s[:, :, None]

    return kernel


def _pick_batch_tile(B: int, bytes_per_batch: int, target_bytes: int = 2 << 20) -> int:
    """Largest divisor of B whose block stays ~<= target_bytes, keeping >=2 grid steps if B >= 2."""
    bt = max(1, min(B, target_bytes // max(1, bytes_per_batch)))
    if B >= 2:
        bt = min(bt, max(1, B // 2))     # keep both TensorCores busy on v7x-style megacore
    while B % bt:
        bt -= 1
    return bt


def eca_block_pallas(x, conv_weight, kernel_size):
    """x: (B, C, H, W); conv_weight: (1, 1, k) float32 (no bias)."""
    B, C, H, W = x.shape
    HW = H * W
    itemsize = jnp.dtype(x.dtype).itemsize

    w = conv_weight.reshape(kernel_size).astype(jnp.float32)            # (k,) taps -> SMEM
    x2d = x.reshape(B, C, HW)                                           # free view (contiguous NCHW)

    Bt = _pick_batch_tile(B, C * HW * itemsize)
    grid = (pl.cdiv(B, Bt),)

    cost = pl.CostEstimate(
        flops=2 * B * C * HW + 2 * kernel_size * B * C,
        transcendentals=B * C,
        bytes_accessed=2 * B * C * HW * itemsize + kernel_size * 4,
    )

    out2d = pl.pallas_call(
        _make_eca_kernel(kernel_size, HW),
        out_shape=jax.ShapeDtypeStruct((B, C, HW), x.dtype),
        grid_spec=pltpu.PrefetchScalarGridSpec(
            num_scalar_prefetch=0,
            grid=grid,
            in_specs=[
                pl.BlockSpec(memory_space=pltpu.MemorySpace.SMEM),       # conv taps
                pl.BlockSpec((Bt, C, HW), lambda b: (b, 0, 0)),          # x tile (lane-dense)
            ],
            out_specs=pl.BlockSpec((Bt, C, HW), lambda b: (b, 0, 0)),
        ),
        compiler_params=pltpu.CompilerParams(
            dimension_semantics=("parallel",)),
        cost_estimate=cost,
    )(w, x2d)

    return out2d.reshape(B, C, H, W)


def eca_block_ref(x, conv_weight, kernel_size):
    """Pure-JAX reference mirroring the PyTorch forward exactly."""
    pad = (kernel_size - 1) // 2
    w = conv_weight.reshape(kernel_size)
    y = jnp.mean(x.astype(jnp.float32), axis=(2, 3))                     # (B, C)
    yp = jnp.pad(y, ((0, 0), (pad, pad)))                                # zero padding along C
    z = jnp.zeros_like(y)
    C = y.shape[1]
    for i in range(kernel_size):
        z = z + w[i] * yp[:, i:i + C]
    s = jax.nn.sigmoid(z)
    return x * s[:, :, None, None].astype(x.dtype)


if __name__ == "__main__":
    # channel=8 -> kernel_size = int(|(log2(8)+1)/2|) = 2 -> bumped to 3 (odd), padding=1
    channel, b_param, gamma = 8, 1, 2
    kernel_size = int(abs((math.log(channel, 2) + b_param) / gamma))
    kernel_size = kernel_size if kernel_size % 2 else kernel_size + 1

    B, C, H, W = 2, channel, 16, 16

    key = jax.random.PRNGKey(0)
    kx, kw = jax.random.split(key)
    x = jax.random.normal(kx, (B, C, H, W), dtype=jnp.float32)
    # Deterministic Conv1d(1, 1, k, bias=False) weight (synthetic init, PyTorch-like scale).
    bound = 1.0 / math.sqrt(kernel_size)
    conv_weight = jax.random.uniform(kw, (1, 1, kernel_size),
                                     minval=-bound, maxval=bound, dtype=jnp.float32)

    out = eca_block_pallas(x, conv_weight, kernel_size)
    out = jax.block_until_ready(out)

    ref = eca_block_ref(x, conv_weight, kernel_size)
    np.testing.assert_allclose(np.asarray(out), np.asarray(ref), rtol=1e-5, atol=1e-5)

    print("KERNEL_OK")
</pallas_src>

<mosaic_0001>
module attributes {stable_mosaic.version = 11 : i64} {
  func.func @kernel(%arg0: i32, %arg1: memref<3xf32, #tpu.memory_space<smem>>, %arg2: memref<1x8x256xf32, #tpu.memory_space<vmem>>, %arg3: memref<1x8x256xf32, #tpu.memory_space<vmem>>) attributes {dimension_semantics = [#tpu.dimension_semantics<parallel>], iteration_bounds = array<i64: 2>, scalar_prefetch = 0 : i64, scratch_operands = 0 : i64, tpu.core_type = #tpu.core_type<tc>, window_params = [{transform_indices = @transform_0, window_bounds = array<i64: 3>}, {transform_indices = @transform_1, window_bounds = array<i64: 1, 8, 256>}, {transform_indices = @transform_2, window_bounds = array<i64: 1, 8, 256>}]} {
    %c0 = arith.constant 0 : index
    %c0_0 = arith.constant 0 : index
    %c0_1 = arith.constant 0 : index
    %0 = vector.load %arg2[%c0, %c0_0, %c0_1] : memref<1x8x256xf32, #tpu.memory_space<vmem>>, vector<1x8x256xf32>
    %cst = arith.constant dense<0.000000e+00> : vector<1x8xf32>
    %1 = vector.multi_reduction <add>, %0, %cst [2] : vector<1x8x256xf32> to vector<1x8xf32>
    %cst_2 = arith.constant 3.906250e-03 : f32
    %2 = vector.broadcast %cst_2 : f32 to vector<1x8xf32>
    %3 = arith.mulf %1, %2 : vector<1x8xf32>
    %cst_3 = arith.constant 0.000000e+00 : f32
    %4 = vector.broadcast %cst_3 : f32 to vector<1x1xf32>
    %5 = tpu.concatenate %4, %3, %4 in 1 : vector<1x1xf32>, vector<1x8xf32>, vector<1x1xf32> -> vector<1x10xf32>
    %cst_4 = arith.constant 0.000000e+00 : f32
    %6 = vector.broadcast %cst_4 : f32 to vector<1x8xf32>
    %c0_5 = arith.constant 0 : index
    %7 = memref.load %arg1[%c0_5] : memref<3xf32, #tpu.memory_space<smem>>
    %8 = vector.extract_strided_slice %5 {offsets = [0, 0], sizes = [1, 8], strides = [1, 1]} : vector<1x10xf32> to vector<1x8xf32>
    %9 = vector.broadcast %7 : f32 to vector<1x8xf32>
    %10 = arith.mulf %9, %8 : vector<1x8xf32>
    %11 = arith.addf %6, %10 : vector<1x8xf32>
    %c1 = arith.constant 1 : index
    %12 = memref.load %arg1[%c1] : memref<3xf32, #tpu.memory_space<smem>>
    %13 = vector.extract_strided_slice %5 {offsets = [0, 1], sizes = [1, 8], strides = [1, 1]} : vector<1x10xf32> to vector<1x8xf32>
    %14 = vector.broadcast %12 : f32 to vector<1x8xf32>
    %15 = arith.mulf %14, %13 : vector<1x8xf32>
    %16 = arith.addf %11, %15 : vector<1x8xf32>
    %c2 = arith.constant 2 : index
    %17 = memref.load %arg1[%c2] : memref<3xf32, #tpu.memory_space<smem>>
    %18 = vector.extract_strided_slice %5 {offsets = [0, 2], sizes = [1, 8], strides = [1, 1]} : vector<1x10xf32> to vector<1x8xf32>
    %19 = vector.broadcast %17 : f32 to vector<1x8xf32>
    %20 = arith.mulf %19, %18 : vector<1x8xf32>
    %21 = arith.addf %16, %20 : vector<1x8xf32>
    %22 = arith.negf %21 : vector<1x8xf32>
    %23 = math.exp %22 : vector<1x8xf32>
    %cst_6 = arith.constant 1.000000e+00 : f32
    %24 = vector.broadcast %cst_6 : f32 to vector<1x8xf32>
    %25 = arith.addf %24, %23 : vector<1x8xf32>
    %26 = arith.divf %24, %25 : vector<1x8xf32>
    %27 = vector.shape_cast %26 : vector<1x8xf32> to vector<1x8x1xf32>
    %28 = vector.broadcast %27 : vector<1x8x1xf32> to vector<1x8x256xf32>
    %29 = arith.mulf %0, %28 : vector<1x8x256xf32>
    %c0_7 = arith.constant 0 : index
    %c0_8 = arith.constant 0 : index
    %c0_9 = arith.constant 0 : index
    %30 = vector.load %arg3[%c0_7, %c0_8, %c0_9] : memref<1x8x256xf32, #tpu.memory_space<vmem>>, vector<1x8x256xf32>
    tpu.vector_store %arg3[%c0_7, %c0_8, %c0_9], %29 {strides = array<i32>} : memref<1x8x256xf32, #tpu.memory_space<vmem>>, vector<1x8x256xf32>,
    return
  }
  func.func @transform_0(%arg0: i32) -> i32 {
    %c0_i32 = arith.constant 0 : i32
    %c0_i32_0 = arith.constant 0 : i32
    return %c0_i32 : i32
  }
  func.func @transform_1(%arg0: i32) -> (i32, i32, i32) {
    %c0_i32 = arith.constant 0 : i32
    %c0_i32_0 = arith.constant 0 : i32
    %c0_i32_1 = arith.constant 0 : i32
    return %arg0, %c0_i32, %c0_i32_0 : i32, i32, i32
  }
  func.func @transform_2(%arg0: i32) -> (i32, i32, i32) {
    %c0_i32 = arith.constant 0 : i32
    %c0_i32_0 = arith.constant 0 : i32
    %c0_i32_1 = arith.constant 0 : i32
    return %arg0, %c0_i32, %c0_i32_0 : i32, i32, i32
  }
}

</mosaic_0001>

<bundles_post_ra>
// kernel: tpu_custom_call.1
= control target key start
LH: loop header
LB: loop body
LE: loop exit
PB: predicated region body
PF: predicated region fallthrough
CT: control target
= control target key end

     0   :  { %7 = vsyncpa [#allocation5], 0  ;;  %s753_s0 = inlined_call_operand.hbm [shape: f32[3], index: 0, kind: input, shape index: {}]   ;;  %s754_s1 = inlined_call_operand.hbm [shape: f32[2,8,256], index: 1, kind: input, shape index: {}]   ;;  %s755_s2 = inlined_call_operand.hbm [shape: f32[2,8,256], index: 2, kind: output, shape index: {}]  }
   0x1   :  { %8 = vsyncpa [#allocation3], 0 }
   0x2   :  { %10 = vsyncpa [#allocation3 + $0x1], 0 }
   0x3   :  { %11 = vsyncpa [#allocation4], 0 }
   0x4   :  { %13 = vsyncpa [#allocation4 + $0x1], 0  ;;  %s544_s9 = smov 0   ;;  %s546_s10 = smov 0  }
   0x5   :  { %s548_s11 = smov 0   ;;  %s550_s12 = smov 0  }
   0x6 LB: > { %s565_s13 = sadd.s32 4294967295, %s522_s12   ;;  %s325_s14 = sadd.s32 4294967294, %s522_s12   ;;  %s522_s12 = sphi %s550_s12, %s776_s12   ;;  %s518_s11 = sphi %s548_s11, %s775_s11   ;;  %s514_s10 = sphi %s546_s10, %s774_s10   ;;  %s510_s9 = sphi %s544_s9, %s773_s9  }
   0x7   : > { %p60_p0 = scmp.ne.s32.totalorder %s514_s10, %s510_s9  ;;  %p756_p1 = scmp.eq.s32.totalorder %s565_s13, 0 }
   0x8   : > { %p90_p3 = scmp.eq.s32.totalorder %s325_s14, 1  ;;  %p326_p5 = scmp.ge.s32.totalorder %s522_s12, 1 }
   0x9   : > { %p574_p4 = por %p756_p1, %p60_p0  ;;  %p97_p7 = scmp.lt.s32.totalorder %s522_s12, 3 }
   0xa   : > { %p579_p6 = por %p90_p3, %p60_p0  ;;  %s590_s18 = sadd.s32 1, %s522_s12  }
   0xb   : > { %s759_s15 = scalar_select %p574_p4, 1, 0 }
   0xc   : > { %s760_s16 = scalar_select %p579_p6, 1, 0 }
   0xd   : > { %p584_p8 = pnand %p326_p5, %p97_p7  ;;  %s44_s19 = ssub.s32 %s522_s12, %s590_s18 }
   0xe   : > { %s47_s20 = sadd.s32 1, %s518_s11  ;;  %p603_p12 = scmp.eq.s32.totalorder %s44_s19, 0 }
   0xf   : > { %p354_p10 = pneg %p584_p8  ;;  %p54_p13 = scmp.ne.s32.totalorder %s518_s11, %s514_s10 }
  0x10   : > { %p55_p0 = scmp.eq.s32.totalorder %s522_s12, 0  ;;  %p367_p3 = scmp.lt.s32.totalorder %s522_s12, 2 }
  0x11   : > { %p599_p11 = pnand %p354_p10, %p756_p1  ;;  %s409_s25 = scalar_lea.hbm %s753_s0, 16 }
  0x12   : > { %p410_p5 = scmp.ne.s32.totalorder %s753_s0, %s409_s25  ;;  %p416_p1 = scmp.lt.u32.totalorder %s409_s25, %s753_s0 }
  0x13   : > { %p411_p7 = pneg %p599_p11 }
  0x15   : > { %p412_p10 = pnand %p411_p7, %p410_p5 }
  0x17   : > { %p413_p9 = pneg %p412_p10 }
  0x19   : > { %p418_p2 = pnand %p416_p1, %p413_p9 }
  0x1b   : > { %421 = shalt.err (!%p418_p2)
}
  0x1c   : > { %s524_s30 = smov [#allocation2]   ;;  %p56_p1 = por %p55_p0, %p54_p13 }
  0x1d   : > { %357 = dma.hbm_to_smem (!%p599_p11), %s753_s0, 16, %s524_s30, [#allocation5]  }
  0x1e   : > { %s630_s5 = scalar_select %p603_p12, %s518_s11, %s47_s20  }
  0x1f   : > { %p764_p2 = scmp.eq.s32.totalorder %s565_s13, 1  ;;  %s119_s7 = sand.u32 1, %s518_s11  }
  0x20   : > { %s344_s8 = sshll.u32 %s522_s12, 8  ;;  %s329_s14 = sshll.u32 %s119_s7, 4 }
  0x21   : > { %p642_p9 = por %p764_p2, %p54_p13  ;;  %s651_s23 = scalar_lea.hbm %s754_s1, %s344_s8 }
  0x22   : > { %s123_s20 = scalar_lea.vmem [#allocation6], %s329_s14  ;;  %p655_p11 = pnand %p367_p3, %p56_p1 }
  0x23   : > { %s765_s6 = scalar_select %p642_p9, 1, 0 }
  0x24   : > { %s131_s22 = sshll.u32 %s123_s20, 4  ;;  %s120_s25 = scalar_lea.sflag [#allocation3], %s119_s7  ;;  %s659_s22 = int_to_ptr.vmem [resolvable:$true] %s131_s22 }
  0x25   : > { %s422_s26 = scalar_lea.hbm %s651_s23, 256  ;;  %p424_p13 = pneg %p655_p11 }
  0x26   : > { %p423_p12 = scmp.ne.s32.totalorder %s651_s23, %s422_s26  ;;  %s427_s29 = scalar_lea.hbm %s754_s1, 512 }
  0x27   : > { %p428_p3 = scmp.lt.u32.totalorder %s651_s23, %s754_s1  ;;  %p429_p7 = scmp.lt.u32.totalorder %s427_s29, %s422_s26 }
  0x28   : > { %p425_p0 = pnand %p424_p13, %p423_p12  ;;  %p431_p1 = scmp.lt.u32.totalorder %s422_s26, %s651_s23 }
  0x29   : > { %p430_p10 = por %p429_p7, %p428_p3 }
  0x2a   : > { %p426_p5 = pneg %p425_p0 }
  0x2b   : > { %p432_p2 = por %p431_p1, %p430_p10 }
  0x2d   : > { %p433_p6 = pnand %p432_p2, %p426_p5 }
  0x2f   : > { %436 = shalt.err (!%p433_p6)
}
  0x30   : > { %s437_s4 = scalar_lea.vmem %s659_s22, 256  ;;  %s525_s7 = smov [#allocation6]  }
  0x31   : > { %p438_p12 = scmp.ne.s32.totalorder %s659_s22, %s437_s4  ;;  %s442_s8 = sshll.u32 %s525_s7, 4  ;;  %s443_s8 = int_to_ptr.vmem [resolvable:$false] %s442_s8 }
  0x32   : > { %s444_s14 = scalar_lea.vmem %s443_s8, 512  ;;  %p445_p4 = scmp.lt.s32.totalorder %s659_s22, %s443_s8 }
  0x33   : > { %p440_p0 = pnand %p438_p12, %p424_p13  ;;  %p446_p3 = scmp.lt.s32.totalorder %s444_s14, %s437_s4 }
  0x35   : > { %p441_p9 = pneg %p440_p0  ;;  %p447_p7 = por %p446_p3, %p445_p4 }
  0x37   : > { %p448_p10 = pnand %p447_p7, %p441_p9 }
  0x39   : > { %451 = shalt.err (!%p448_p10)
}
  0x3a   : > { %361 = dma.hbm_to_vmem [thread:$0]  (!%p655_p11), %s651_s23, 256, %s659_s22, %s120_s25  }
  0x3b   : > { %140 = sbr.rel (%p584_p8) target bundleno = 504 (0x1f8), region = 28  ;;  %p767_p6 = scmp.eq.s32.totalorder (!%p584_p8), %s565_s13, 0 }
  0x42   : > { %497 = dma.done.wait (%p767_p6), [#allocation5], 16   ;;  %p768_p13 = pmov %p767_p6 }
  0x43   : > { %s693_s19 = sand.u32 1, %s514_s10   ;;  %p769_p4 = scmp.ne.s32.totalorder %s759_s15, 0 }
  0x44   : > { %499 = vsyncadd (%p768_p13), [#allocation5], 4294967280  ;;  %s334_s21 = sshll.u32 %s693_s19, 4  ;;  %s147_s20 = scalar_lea.sflag [#allocation3], %s693_s19 }
  0x45   : > { %s150_s23 = scalar_lea.vmem [#allocation6], %s334_s21 }
  0x46   : > { %501 = dma.done.wait (%p769_p4), %s147_s20, 256  }
  0x47   : > { %503 = vsyncadd (%p769_p4), %s147_s20, 4294967040 }
  0x48   : > { %155 = sfence }
  0x49   : > { %v172_v0 = vld [vmem:[%s150_s23] sm:$0xff]  ;;  %v173_v1 = vld [vmem:[%s150_s23 + $0x8] sm:$0xff]  ;;  %v179_v3 = vlaneseq  ;;  %s337_s17 = sld [smem:[#allocation2 + $0x2]]  ;;  %s336_s22 = sld [smem:[#allocation2 + $0x1]]  ;;  %vm187_vm0 = vcmask 7168   ;;  %vm189_vm1 = vcmask 72704  }
  0x4a   : > { %v174_v2 = vadd.f32 %v173_v1, %v172_v0  ;;  %s526_s15 = smov 126   ;;  %s527_s24 = smov 127  }
  0x4b   : > { %v180_v4 = vand.u32 127, %v179_v3  ;;  %v183_v6 = vshrl.u32 %v179_v3, 7  ;;  %s191_s25 = sld [smem:[#allocation2]]  ;;  %s345_s26 = sshll.u32 %s565_s13, 8 }
  0x4c   : > { %175 = vadd.xlane.f32.xlu0 %v174_v2  ;;  %s171_s27 = scalar_lea.vmem [#allocation7], %s334_s21  ;;  %s709_s3 = scalar_lea.hbm %s755_s2, %s345_s26 }
  0x4d   : > { %v181_v5 = vadd.s32 4294967295, %v180_v4  ;;  %v219_v26 = vsub.s32 0, %v183_v6  ;;  %s243_s28 = sshll.u32 %s171_s27, 4  ;;  %s229_s4 = scalar_lea.sflag [#allocation4], %s693_s19  ;;  %s711_s28 = int_to_ptr.vmem [resolvable:$true] %s243_s28 }
  0x4e   : > { %s452_s13 = scalar_lea.vmem %s711_s28, 256  ;;  %p770_p9 = scmp.ne.s32.totalorder %s765_s6, 0 }
  0x4f   : > { %v184_v7 = vsub.s32 %v181_v5, %v183_v6  ;;  %v204_v11 = vstv %s337_s17  ;;  %v196_v12 = vstv %s336_s22  ;;  %p453_p8 = scmp.ne.s32.totalorder %s711_s28, %s452_s13  ;;  %s528_s7 = smov [#allocation7]  }
  0x50   : > { %s456_s8 = sshll.u32 %s528_s7, 4  ;;  %s457_s8 = int_to_ptr.vmem [resolvable:$false] %s456_s8 }
  0x51   : > { %v192_v17 = vstv %s191_s25  ;;  %p454_p11 = pnand %p453_p8, %p770_p9  ;;  %s458_s14 = scalar_lea.vmem %s457_s8, 512 }
  0x52   : > { %p459_p1 = scmp.lt.s32.totalorder %s711_s28, %s457_s8  ;;  %p460_p2 = scmp.lt.s32.totalorder %s458_s14, %s452_s13 }
  0x53   : > { %p455_p5 = pneg %p454_p11 }
  0x54   : > { %p461_p12 = por %p460_p2, %p459_p1 }
  0x56   : > { %p462_p0 = pnand %p461_p12, %p455_p5 }
  0xd9   : > { %v176_v8 = vpop.xlane.xlu0 %175 }
  0xda   : > { %v177_v9 = vmul.f32 0.00390625, %v176_v8 }
  0xdc   : > { %v185_v10 = vrot.slane %v177_v9, %v184_v7 }
  0xde   : > { %v188_v13 = vsel %vm187_vm0, 0.0, %v185_v10 }
  0xdf   : > { %v190_v14 = vsel %vm189_vm1, %v188_v13, 0.0 }
  0xe0   : > { %v205_v15 = vmul.f32 %v204_v11, %v190_v14  ;;  %v197_v16 = vmul.f32 %v196_v12, %v190_v14  ;;  %v193_v18 = vmul.f32 %v192_v17, %v190_v14 }
  0xe2   : > { %207 = vrot.lane.b32.xlu1 %v205_v15, %s526_s15  ;;  %199 = vrot.lane.b32.xlu0 %v197_v16, %s527_s24 }
 0x154   : > { %v200_v19 = vpop.permute.xlu0 %199  ;;  %v208_v21 = vpop.permute.xlu1 %207 }
 0x155   : > { %v202_v20 = vadd.f32 %v200_v19, %v193_v18 }
 0x157   : > { %v210_v22 = vadd.f32 %v208_v21, %v202_v20 }
 0x159   : > { %v338_v23 = vmul.f32 -1.442695, %v210_v22 }
 0x15b   : > { %405 = vpow2.f32 %v338_v23 }
 0x165   : > { %v406_v24 = vpop.eup %405 }
 0x166   : > { %v214_v25 = vadd.f32 1.0, %v406_v24 }
 0x168   : > { %407 = vrcp.f32 %v214_v25 }
 0x172   : > { %v408_v27 = vpop.eup %407 }
 0x173   : > { %v220_v28 = vrot.slane %v408_v27, %v219_v26 }
 0x175   : > { %222 = vbcast.lane.b32.xlu1 %v220_v28, 256 }
 0x1e7   : > { %v223_v29 = vpop.permute.xlu1 %222 }
 0x1e8   : > { %v224_v30 = vmul.f32 %v223_v29, %v172_v0  ;;  %v225_v31 = vmul.f32 %v223_v29, %v173_v1 }
 0x1ea   : > { %226 = vst [vmem:[%s171_s27] sm:$0xff] %v224_v30  ;;  %227 = vst [vmem:[%s171_s27 + $0x8] sm:$0xff] %v225_v31 }
 0x1eb   : > { %465 = shalt.err (!%p462_p0)
}
 0x1ec   : > { %s466_s19 = scalar_lea.hbm %s709_s3, 256  ;;  %s470_s23 = scalar_lea.hbm %s755_s2, 512 }
 0x1ed   : > { %p467_p3 = scmp.ne.s32.totalorder %s709_s3, %s466_s19  ;;  %p471_p6 = scmp.lt.u32.totalorder %s709_s3, %s755_s2 }
 0x1ee   : > { %p472_p13 = scmp.lt.u32.totalorder %s470_s23, %s466_s19  ;;  %p474_p8 = scmp.lt.u32.totalorder %s466_s19, %s709_s3 }
 0x1ef   : > { %p468_p7 = pnand %p467_p3, %p770_p9 }
 0x1f0   : > { %p473_p4 = por %p472_p13, %p471_p6 }
 0x1f1   : > { %p469_p10 = pneg %p468_p7 }
 0x1f2   : > { %p475_p11 = por %p474_p8, %p473_p4 }
 0x1f4   : > { %p476_p5 = pnand %p475_p11, %p469_p10 }
 0x1f6   : > { %479 = shalt.err (!%p476_p5)
}
 0x1f7   : > { %352 = dma.vmem_to_hbm [thread:$0]  (%p770_p9), %s711_s28, 256, %s709_s3, %s229_s4  }
 0x1f8 PF: > { %s255_s15 = sand.u32 1, %s510_s9   ;;  %p771_p1 = scmp.ne.s32.totalorder %s760_s16, 0 }
 0x1f9   : > { %p772_p2 = scmp.ge.s32.totalorder %s522_s12, 2  ;;  %s256_s24 = scalar_lea.sflag [#allocation4], %s255_s15 }
 0x1fb   : > { %p363_p12 = pnand %p772_p2, %p771_p1 }
 0x1fd   : > { %505 = dma.done.wait (!%p363_p12), %s256_s24, 256  }
 0x1fe   : > { %507 = vsyncadd (!%p363_p12), %s256_s24, 4294967040  ;;  %p16_p0 = scmp.ge.s32.totalorder %s590_s18, 4   ;;  %s773_s9 = smov %s514_s10 }
 0x1ff   : > { %s774_s10 = smov %s518_s11  ;;  %s775_s11 = smov %s630_s5 }
 0x200   : > { %s776_s12 = smov %s590_s18  ;;  %18 = sbr.rel (!%p16_p0) target bundleno = 6 (0x6), region = 78 }
 0x207   :  { %261 = vsyncpa [#allocation3], 1 }
 0x208   :  { %263 = vsyncpa [#allocation3 + $0x1], 1 }
 0x209   :  { %264 = vsyncpa [#allocation4], 1 }
 0x20a   :  { %266 = vsyncpa [#allocation4 + $0x1], 1 }
 0x20b   :  { %267 = vsyncpa [#allocation5], 1 }
 0x20c   :  { %269 = vsyncpa [#allocation5 + $0x1], 1 }

</bundles_post_ra>
